<compile_context>
chip_gen: v7x
topology: tpu7x:2x2x1
jax: 0.10.0
libtpu: 0.0.40
codegen_flags: <defaults>
</compile_context>

<pallas_src>
import functools

import numpy as np
import jax
import jax.numpy as jnp
from jax.experimental import pallas as pl
from jax.experimental.pallas import tpu as pltpu

# ---- config (mirrors EntityEmbbederKB.__init__) ----
DIM_PRED = 16        # config['dim_predicates']
DIM_ENTS = 16        # config['dim_entities']
DIM_HIDDEN = 32      # config['dim_hidden']
MAX_FACTS = 8        # config['max_facts']  (== f32 sublane count -> single-tile fact max)
NUM_PREDICATES = 12  # predicates.size   (index 0 == __PADDING__)
NUM_ENTITIES = 20    # entities.size     (index 0 == __PADDING__, includes NILL)
DICT_SIZE = 10       # len(self.dictionary)
P_PADDING = 0
E_PADDING = 0

VOCAB = NUM_PREDICATES + NUM_ENTITIES   # rows of the fused (embedding @ W) table = 32
TG_MAX = 64                             # entity-groups per grid step
CHUNK_G = 8                             # groups per in-kernel chunk (8 f32 output rows)


def _pick_group():
    """Entities packed per output row. GROUP*VOCAB is the contraction depth and
    GROUP*DIM_HIDDEN the output lane width: 4 -> 128x128 (v2..v5e MXU tile),
    8 -> 256x256 (one pass on v6e / v7x MXUs)."""
    try:
        kind = jax.devices()[0].device_kind.lower()
    except Exception:
        return 4
    for old in ("v2", "v3", "v4", "v5"):
        if old in kind:
            return 4
    return 8   # v6e / v7x (and unknown/newer)


def kb_kernel(hot_ref, tab_ref, b_ref, out_ref, *, max_facts, chunk_g):
    """One tile of TG entity-groups.

    hot_ref: [TG*F, G*VOCAB] int8  -- per (group, fact) row: 0/1 multi-hot over the
             block-diagonal fused table rows (2 ones per entity of the group).
    tab_ref: [G*VOCAB, G*H] bf16   -- kron(eye(G), embedding @ W), block-diagonal.
    b_ref:   [1, G*H] f32          -- Linear bias tiled G times.
    out_ref: [TG, G*H] f32         -- packed per-entity hidden vectors (lane-dense).
    """
    tg, big_h = out_ref.shape
    rows_per_chunk = chunk_g * max_facts
    n_chunks = tg // chunk_g
    bias = b_ref[...]                                   # [1, G*H]

    # Statically-unrolled chunk loop: bounds the [rows, G*H] intermediates to
    # chunk-sized live ranges (no full-tile spill) while letting adjacent chunks'
    # loads / MXU pushes / reduces co-issue in different VLIW slots.
    for c in range(n_chunks):
        r0 = c * rows_per_chunk
        g0 = c * chunk_g
        hot = hot_ref[r0:r0 + rows_per_chunk, :]                 # int8  [rows, G*V]
        hot = hot.astype(jnp.float32).astype(jnp.bfloat16)       # exact 0/1 in bf16
        hid = jnp.dot(hot, tab_ref[...],                         # single-pass bf16 MXU
                      preferred_element_type=jnp.float32)
        hid = jnp.maximum(hid + bias, 0.0)                       # Linear bias + ReLU
        # torch.max over the facts axis; unmasked full-lane 8-row f32 store.
        out_ref[g0:g0 + chunk_g, :] = jnp.max(
            hid.reshape(chunk_g, max_facts, big_h), axis=1)


def _kb_pallas(hot, big_tab, big_bias, *, tg):
    rows, big_v = hot.shape
    big_h = big_bias.shape[1]
    n_groups_pad = rows // MAX_FACTS
    kernel = functools.partial(kb_kernel, max_facts=MAX_FACTS,
                               chunk_g=min(CHUNK_G, tg))
    return pl.pallas_call(
        kernel,
        out_shape=jax.ShapeDtypeStruct((n_groups_pad, big_h), jnp.float32),
        grid_spec=pltpu.PrefetchScalarGridSpec(
            num_scalar_prefetch=0,
            grid=(n_groups_pad // tg,),
            in_specs=[
                pl.BlockSpec((tg * MAX_FACTS, big_v), lambda i: (i, 0)),  # selector tile
                pl.BlockSpec(big_tab.shape, lambda i: (0, 0)),    # fused table (revisited)
                pl.BlockSpec(big_bias.shape, lambda i: (0, 0)),   # bias (revisited)
            ],
            out_specs=pl.BlockSpec((tg, big_h), lambda i: (i, 0)),
        ),
        compiler_params=pltpu.CompilerParams(
            dimension_semantics=("parallel",)),   # >=2 steps -> sharded over v7x's 2 TCs
    )(hot, big_tab, big_bias)


def _choose_tiles(n_entities, group):
    """Static tiling derived only from the (static-under-jit) candidate count."""
    n_groups = -(-n_entities // group)
    n_groups_pad = -(-n_groups // 8) * 8           # 8-row multiples: unmasked f32 stores
    if n_groups_pad <= 8:
        return n_groups_pad, n_groups_pad          # one grid step; nothing worth sharding
    n_groups_pad = -(-n_groups_pad // 16) * 16
    tg = min(TG_MAX, n_groups_pad // 2)            # >=2 'parallel' steps for v7x's 2 TCs
    n_groups_pad = -(-n_groups_pad // tg) * tg
    return n_groups_pad, tg


def build_kb_tables(kb_preds, kb_objs, p_table, e_table, W, b, group):
    """Once-per-KB / once-per-parameter prep (all candidate-independent).

    Fuses Embedding + Linear:  cat(p_emb, e_emb) @ W == multi_hot @ fused, where
    fused = [p_table @ W[:Dp] ; e_table @ W[Dp:]]  (VOCAB x H); the block-diagonal
    kron(eye(G), fused) lets G entities share one lane-dense matmul row.
    """
    hi = jax.lax.Precision.HIGHEST
    fused = jnp.concatenate(
        [jnp.dot(p_table, W[:DIM_PRED], precision=hi),
         jnp.dot(e_table, W[DIM_PRED:], precision=hi)], axis=0)        # [VOCAB, H] f32
    big_tab = jnp.kron(jnp.eye(group, dtype=fused.dtype),
                       fused).astype(jnp.bfloat16)                     # [G*V, G*H] bf16
    big_bias = jnp.tile(jnp.reshape(b, (1, DIM_HIDDEN)),
                        (1, group)).astype(jnp.float32)                # [1, G*H]

    # Per-dictionary-entry multi-hot selector over the fused table's rows.
    # Predicate columns live in [0, NUM_PREDICATES), object columns in
    # [NUM_PREDICATES, VOCAB): provably disjoint, so the int8 sum stays exactly 0/1
    # and 'sum of selected rows' == pred_emb @ Wp + obj_emb @ We (no drops/doubles).
    assert VOCAB == NUM_PREDICATES + NUM_ENTITIES
    p_hot = jax.nn.one_hot(kb_preds, VOCAB, dtype=jnp.int8)            # [D, F, V]
    e_hot = jax.nn.one_hot(kb_objs + NUM_PREDICATES, VOCAB, dtype=jnp.int8)
    kb_hot = (p_hot + e_hot).astype(jnp.int8)
    # Note: padded facts (index 0) go through the embedder exactly like in the
    # original module and contribute relu(emb[0] @ W + b) to the per-entity max.
    return big_tab, big_bias, kb_hot


@functools.partial(jax.jit, static_argnames=("group",))
def _kb_forward_impl(flat_candidates, kb_hot, big_tab, big_bias, *, group):
    n = flat_candidates.shape[0]
    n_groups_pad, tg = _choose_tiles(n, group)     # static under jit (shape-only)
    n_pad_ent = n_groups_pad * group
    # No dedup: duplicate candidates are recomputed on the MXU (cheaper than the
    # original python-dict dedup + host<->device sync it would require).
    hot = jnp.take(kb_hot, flat_candidates, axis=0)                   # [N, F, V] int8
    hot = jnp.pad(hot, ((0, n_pad_ent - n), (0, 0), (0, 0)))
    # Pack GROUP entities per matmul row (band j of group g holds entity g*G + j).
    hot = hot.reshape(n_groups_pad, group, MAX_FACTS, VOCAB)
    hot = hot.transpose(0, 2, 1, 3).reshape(n_groups_pad * MAX_FACTS, group * VOCAB)
    packed = _kb_pallas(hot, big_tab, big_bias, tg=tg)                # [n_groups_pad, G*H]
    return packed.reshape(n_pad_ent, DIM_HIDDEN)[:n]                  # [N, H]


def entity_embedder_kb_forward(candidates, kb_hot, big_tab, big_bias, group):
    """Mirrors EntityEmbbederKB.forward: candidates [..] -> [.., dim_hidden]."""
    flat = candidates.reshape(-1).astype(jnp.int32)
    vecs = _kb_forward_impl(flat, kb_hot, big_tab, big_bias, group=group)
    return vecs.reshape(tuple(candidates.shape) + (DIM_HIDDEN,))


if __name__ == "__main__":
    key = jax.random.PRNGKey(0)
    k1, k2, k3, k4, k5, k6, k7 = jax.random.split(key, 7)

    # --- deterministic parameter init (shapes per module __init__) ---
    p_table = jax.random.normal(k1, (NUM_PREDICATES, DIM_PRED), jnp.float32)
    e_table = jax.random.normal(k2, (NUM_ENTITIES, DIM_ENTS), jnp.float32)
    W = jax.random.normal(k3, (DIM_PRED + DIM_ENTS, DIM_HIDDEN), jnp.float32) * 0.1
    b = jax.random.normal(k4, (DIM_HIDDEN,), jnp.float32) * 0.1
    p_table = p_table.at[P_PADDING].set(0.0)
    e_table = e_table.at[E_PADDING].set(0.0)

    # --- synthetic knowledge base ---
    # TODO(synk): load_triples / Dictionary construction is file-IO preprocessing;
    # replaced with deterministic synthetic pred/obj index tables (max_facts-padded).
    kb_preds = jax.random.randint(k5, (DICT_SIZE, MAX_FACTS), 1, NUM_PREDICATES,
                                  dtype=jnp.int32)
    kb_objs = jax.random.randint(k6, (DICT_SIZE, MAX_FACTS), 1, NUM_ENTITIES,
                                 dtype=jnp.int32)
    kb_preds = kb_preds.at[:, MAX_FACTS - 2:].set(P_PADDING)   # emulate _padding tail
    kb_objs = kb_objs.at[:, MAX_FACTS - 2:].set(E_PADDING)

    group = _pick_group()                        # 4 on <=v5, 8 on v6e/v7x
    big_tab, big_bias, kb_hot = build_kb_tables(
        kb_preds, kb_objs, p_table, e_table, W, b, group)

    # --- example candidates: [batch=2, num_candidates=4] ---
    candidates = jax.random.randint(k7, (2, 4), 0, DICT_SIZE, dtype=jnp.int32)

    out = entity_embedder_kb_forward(candidates, kb_hot, big_tab, big_bias, group)
    out = jax.block_until_ready(out)

    # --- plain-JAX f32 reference (unfused math, original module semantics) ---
    flat = candidates.reshape(-1)
    p_emb = p_table[kb_preds[flat]]                       # [N, F, Dp]
    e_emb = e_table[kb_objs[flat]]                        # [N, F, De]
    cat = jnp.concatenate([p_emb, e_emb], axis=-1)        # [N, F, Dp+De]
    h = jnp.maximum(
        jnp.einsum('nfd,dh->nfh', cat, W,
                   precision=jax.lax.Precision.HIGHEST) + b, 0.0)
    ref = jnp.max(h, axis=1).reshape(tuple(candidates.shape) + (DIM_HIDDEN,))

    # bf16 MXU operands in the kernel -> ~4e-3 relative error vs the f32 reference.
    np.testing.assert_allclose(np.asarray(out), np.asarray(ref), atol=2e-2, rtol=2e-2)
    assert out.shape == tuple(candidates.shape) + (DIM_HIDDEN,)
    print("KERNEL_OK")
</pallas_src>

<mosaic_0001>
module attributes {stable_mosaic.version = 11 : i64} {
  func.func @kb_kernel(%arg0: i32, %arg1: memref<64x256xi8, #tpu.memory_space<vmem>>, %arg2: memref<256x256xbf16, #tpu.memory_space<vmem>>, %arg3: memref<1x256xf32, #tpu.memory_space<vmem>>, %arg4: memref<8x256xf32, #tpu.memory_space<vmem>>) attributes {dimension_semantics = [#tpu.dimension_semantics<parallel>], iteration_bounds = array<i64: 1>, scalar_prefetch = 0 : i64, scratch_operands = 0 : i64, tpu.core_type = #tpu.core_type<tc>, window_params = [{transform_indices = @transform_0, window_bounds = array<i64: 64, 256>}, {pipeline_mode = #tpu.pipeline_mode<synchronous>, transform_indices = @transform_1, window_bounds = array<i64: 256, 256>}, {pipeline_mode = #tpu.pipeline_mode<synchronous>, transform_indices = @transform_2, window_bounds = array<i64: 1, 256>}, {transform_indices = @transform_3, window_bounds = array<i64: 8, 256>}]} {
    %c0 = arith.constant 0 : index
    %c0_0 = arith.constant 0 : index
    %0 = vector.load %arg3[%c0, %c0_0] : memref<1x256xf32, #tpu.memory_space<vmem>>, vector<1x256xf32>
    %c0_1 = arith.constant 0 : index
    %c0_2 = arith.constant 0 : index
    %1 = vector.load %arg1[%c0_1, %c0_2] : memref<64x256xi8, #tpu.memory_space<vmem>>, vector<64x256xi8>
    %2 = arith.sitofp %1 : vector<64x256xi8> to vector<64x256xf32>
    %3 = arith.truncf %2 : vector<64x256xf32> to vector<64x256xbf16>
    %c0_3 = arith.constant 0 : index
    %c0_4 = arith.constant 0 : index
    %4 = vector.load %arg2[%c0_3, %c0_4] : memref<256x256xbf16, #tpu.memory_space<vmem>>, vector<256x256xbf16>
    %cst = arith.constant dense<0.000000e+00> : vector<64x256xf32>
    %5 = tpu.matmul %3, %4, %cst {dimension_numbers = #tpu.dot_dimension_numbers<[1], [0], [0], [1], [0, 0, 1, 1], [], []>} : vector<64x256xbf16>, vector<256x256xbf16>, vector<64x256xf32> -> vector<64x256xf32>
    %6 = vector.broadcast %0 : vector<1x256xf32> to vector<64x256xf32>
    %7 = arith.addf %5, %6 : vector<64x256xf32>
    %cst_5 = arith.constant 0.000000e+00 : f32
    %8 = vector.broadcast %cst_5 : f32 to vector<64x256xf32>
    %9 = arith.maximumf %7, %8 : vector<64x256xf32>
    %10 = vector.shape_cast %9 : vector<64x256xf32> to vector<8x8x256xf32>
    %cst_6 = arith.constant dense<0xFF800000> : vector<8x256xf32>
    %11 = vector.multi_reduction <maximumf>, %10, %cst_6 [1] : vector<8x8x256xf32> to vector<8x256xf32>
    %c0_7 = arith.constant 0 : index
    %c0_8 = arith.constant 0 : index
    %12 = vector.load %arg4[%c0_7, %c0_8] : memref<8x256xf32, #tpu.memory_space<vmem>>, vector<8x256xf32>
    tpu.vector_store %arg4[%c0_7, %c0_8], %11 {strides = array<i32>} : memref<8x256xf32, #tpu.memory_space<vmem>>, vector<8x256xf32>,
    return
  }
  func.func @transform_0(%arg0: i32) -> (i32, i32) {
    %c0_i32 = arith.constant 0 : i32
    %c0_i32_0 = arith.constant 0 : i32
    return %arg0, %c0_i32 : i32, i32
  }
  func.func @transform_1(%arg0: i32) -> (i32, i32) {
    %c0_i32 = arith.constant 0 : i32
    %c0_i32_0 = arith.constant 0 : i32
    %c0_i32_1 = arith.constant 0 : i32
    return %c0_i32, %c0_i32_0 : i32, i32
  }
  func.func @transform_2(%arg0: i32) -> (i32, i32) {
    %c0_i32 = arith.constant 0 : i32
    %c0_i32_0 = arith.constant 0 : i32
    %c0_i32_1 = arith.constant 0 : i32
    return %c0_i32, %c0_i32_0 : i32, i32
  }
  func.func @transform_3(%arg0: i32) -> (i32, i32) {
    %c0_i32 = arith.constant 0 : i32
    %c0_i32_0 = arith.constant 0 : i32
    return %arg0, %c0_i32 : i32, i32
  }
}

</mosaic_0001>

<bundles_post_ra>
// kernel: _kb_forward_impl.1
= control target key start
LH: loop header
LB: loop body
LE: loop exit
PB: predicated region body
PF: predicated region fallthrough
CT: control target
= control target key end

     0   :  { %v60_v44 = vlaneseq  ;;  %vm431_vm0 = vcmask 1041409   ;;  %vm433_vm1 = vcmask 1042434   ;;  %vm435_vm2 = vcmask 1043459   ;;  %s763_s1 = inlined_call_operand.vmem [shape: bf16[256,256], index: 1, kind: input, shape index: {}]   ;;  %s764_s0 = inlined_call_operand.vmem [shape: s8[64,256], index: 0, kind: input, shape index: {}]   ;;  %s765_s2 = inlined_call_operand.vmem [shape: f32[1,256], index: 2, kind: input, shape index: {}]   ;;  %s766_s3 = inlined_call_operand.vmem [shape: f32[8,256], index: 3, kind: output, shape index: {}]  }
   0x1   :  { %v524_v0 = vld [vmem:[%s763_s1 + $0x4] ss:$8 sps:$4 sm:$0xff]   ;;  %v526_v1 = vld [vmem:[%s763_s1] ss:$8 sps:$4 sm:$0xff]   ;;  %v527_v2 = vld [vmem:[%s763_s1 + $0x14] ss:$8 sps:$4 sm:$0xff]  }
   0x2   :  { %230 = vmatprep.subr.bf16.mxu0 %v524_v0  ;;  %492 = vmatprep.subr.bf16.mxu1 %v524_v0  ;;  %v529_v3 = vld [vmem:[%s763_s1 + $0x10] ss:$8 sps:$4 sm:$0xff]   ;;  %v530_v4 = vld [vmem:[%s763_s1 + $0x24] ss:$8 sps:$4 sm:$0xff]   ;;  %v532_v5 = vld [vmem:[%s763_s1 + $0x20] ss:$8 sps:$4 sm:$0xff]  }
   0x3   :  { %231 = vmatpush1.bf16.msra.mxu0 %v526_v1  ;;  %508 = vmatpush1.bf16.msra.mxu1 %v526_v1  ;;  %v533_v6 = vld [vmem:[%s763_s1 + $0x34] ss:$8 sps:$4 sm:$0xff]   ;;  %v535_v7 = vld [vmem:[%s763_s1 + $0x30] ss:$8 sps:$4 sm:$0xff]   ;;  %v536_v8 = vld [vmem:[%s763_s1 + $0x44] ss:$8 sps:$4 sm:$0xff]  }
   0x4   :  { %232 = vmatprep.subr.bf16.mxu0 %v527_v2  ;;  %493 = vmatprep.subr.bf16.mxu1 %v527_v2  ;;  %v538_v9 = vld [vmem:[%s763_s1 + $0x40] ss:$8 sps:$4 sm:$0xff]   ;;  %v539_v10 = vld [vmem:[%s763_s1 + $0x54] ss:$8 sps:$4 sm:$0xff]   ;;  %v541_v11 = vld [vmem:[%s763_s1 + $0x50] ss:$8 sps:$4 sm:$0xff]  }
   0x5   :  { %v542_v12 = vld [vmem:[%s763_s1 + $0x64] ss:$8 sps:$4 sm:$0xff]   ;;  %v639_v14 = vld [vmem:[%s764_s0 + $0x18] sm:$0xff]  ;;  %v544_v17 = vld [vmem:[%s763_s1 + $0x60] ss:$8 sps:$4 sm:$0xff]   ;;  %v61_v45 = vshrl.u32 %v60_v44, 7 }
   0x6   :  { %v634_v13 = vld [vmem:[%s764_s0 + $0x8] sm:$0xff]  ;;  %v24_v16 = vunpack.c.l.s8.bf16 %v639_v14  ;;  %v545_v18 = vld [vmem:[%s763_s1 + $0x74] ss:$8 sps:$4 sm:$0xff]   ;;  %v547_v19 = vld [vmem:[%s763_s1 + $0x70] ss:$8 sps:$4 sm:$0xff]   ;;  %v26_v41 = vunpack.c.h.s8.bf16 %v639_v14  ;;  %vm437_vm3 = vcmask 1044484  }
   0x7   :  { %233 = vmatpush1.bf16.msra.mxu0 %v529_v3  ;;  %509 = vmatpush1.bf16.msra.mxu1 %v529_v3  ;;  %v20_v15 = vunpack.c.l.s8.bf16 %v634_v13  ;;  %v548_v20 = vld [vmem:[%s763_s1 + $0x84] ss:$8 sps:$4 sm:$0xff]   ;;  %v550_v21 = vld [vmem:[%s763_s1 + $0x80] ss:$8 sps:$4 sm:$0xff]   ;;  %v551_v22 = vld [vmem:[%s763_s1 + $0x94] ss:$8 sps:$4 sm:$0xff]   ;;  %v22_v40 = vunpack.c.h.s8.bf16 %v634_v13 }
   0x8   :  { %234 = vmatprep.subr.bf16.mxu0 %v530_v4  ;;  %494 = vmatprep.subr.bf16.mxu1 %v530_v4  ;;  %v553_v23 = vld [vmem:[%s763_s1 + $0x90] ss:$8 sps:$4 sm:$0xff]   ;;  %v554_v24 = vld [vmem:[%s763_s1 + $0xa4] ss:$8 sps:$4 sm:$0xff]   ;;  %v556_v25 = vld [vmem:[%s763_s1 + $0xa0] ss:$8 sps:$4 sm:$0xff]  }
   0x9   :  { %262 = vmatprep.mubr.bf16.mxu0 %v20_v15  ;;  %282 = vmatprep.mubr.bf16.mxu1 %v24_v16  ;;  %v557_v26 = vld [vmem:[%s763_s1 + $0xb4] ss:$8 sps:$4 sm:$0xff]   ;;  %v559_v27 = vld [vmem:[%s763_s1 + $0xb0] ss:$8 sps:$4 sm:$0xff]   ;;  %v560_v28 = vld [vmem:[%s763_s1 + $0xc4] ss:$8 sps:$4 sm:$0xff]  }
   0xa   :  { %v562_v29 = vld [vmem:[%s763_s1 + $0xc0] ss:$8 sps:$4 sm:$0xff]   ;;  %v563_v30 = vld [vmem:[%s763_s1 + $0xd4] ss:$8 sps:$4 sm:$0xff]   ;;  %v565_v31 = vld [vmem:[%s763_s1 + $0xd0] ss:$8 sps:$4 sm:$0xff]  }
   0xb   :  { %235 = vmatpush1.bf16.msra.mxu0 %v532_v5  ;;  %510 = vmatpush1.bf16.msra.mxu1 %v532_v5  ;;  %v566_v32 = vld [vmem:[%s763_s1 + $0xe4] ss:$8 sps:$4 sm:$0xff]   ;;  %v568_v33 = vld [vmem:[%s763_s1 + $0xe0] ss:$8 sps:$4 sm:$0xff]   ;;  %v569_v34 = vld [vmem:[%s763_s1 + $0xf4] ss:$8 sps:$4 sm:$0xff]  }
   0xc   :  { %236 = vmatprep.subr.bf16.mxu0 %v533_v6  ;;  %495 = vmatprep.subr.bf16.mxu1 %v533_v6  ;;  %v571_v35 = vld [vmem:[%s763_s1 + $0xf0] ss:$8 sps:$4 sm:$0xff]   ;;  %v15_v36 = vld [vmem:[%s764_s0] sm:$0xff]  ;;  %v62_v46 = vsub.s32 0, %v61_v45  ;;  %v66_v48 = vsub.s32 1, %v61_v45  ;;  %vm439_vm4 = vcmask 1045509  }
   0xd   :  { %v17_v37 = vld [vmem:[%s764_s0 + $0x10] sm:$0xff]  ;;  %v19_v38 = vunpack.c.l.s8.bf16 %v15_v36  ;;  %v21_v42 = vunpack.c.h.s8.bf16 %v15_v36  ;;  %v14_v47 = vld [vmem:[%s765_s2] sm:$0x3]  ;;  %vm441_vm5 = vcmask 1046534   ;;  %vm443_vm6 = vcmask 1047559  }
   0xe   :  { %v23_v39 = vunpack.c.l.s8.bf16 %v17_v37  ;;  %v25_v43 = vunpack.c.h.s8.bf16 %v17_v37  ;;  %v711_v49 = vrot.slane %v14_v47, %v62_v46  ;;  %v713_v50 = vrot.slane %v14_v47, %v66_v48 }
   0xf   :  { %237 = vmatpush1.bf16.msra.mxu0 %v535_v7  ;;  %511 = vmatpush1.bf16.msra.mxu1 %v535_v7 }
  0x10   :  { %238 = vmatprep.subr.bf16.mxu0 %v536_v8  ;;  %496 = vmatprep.subr.bf16.mxu1 %v536_v8 }
  0x13   :  { %239 = vmatpush1.bf16.msra.mxu0 %v538_v9  ;;  %512 = vmatpush1.bf16.msra.mxu1 %v538_v9 }
  0x14   :  { %240 = vmatprep.subr.bf16.mxu0 %v539_v10  ;;  %497 = vmatprep.subr.bf16.mxu1 %v539_v10 }
  0x17   :  { %241 = vmatpush1.bf16.msra.mxu0 %v541_v11  ;;  %513 = vmatpush1.bf16.msra.mxu1 %v541_v11 }
  0x18   :  { %242 = vmatprep.subr.bf16.mxu0 %v542_v12  ;;  %498 = vmatprep.subr.bf16.mxu1 %v542_v12 }
  0x1b   :  { %243 = vmatpush1.bf16.msra.mxu0 %v544_v17  ;;  %514 = vmatpush1.bf16.msra.mxu1 %v544_v17 }
  0x1c   :  { %244 = vmatprep.subr.bf16.mxu0 %v545_v18  ;;  %499 = vmatprep.subr.bf16.mxu1 %v545_v18 }
  0x1f   :  { %245 = vmatpush1.bf16.msra.mxu0 %v547_v19  ;;  %515 = vmatpush1.bf16.msra.mxu1 %v547_v19 }
  0x20   :  { %246 = vmatprep.subr.bf16.mxu0 %v548_v20  ;;  %500 = vmatprep.subr.bf16.mxu1 %v548_v20 }
  0x23   :  { %247 = vmatpush1.bf16.msra.mxu0 %v550_v21  ;;  %516 = vmatpush1.bf16.msra.mxu1 %v550_v21 }
  0x24   :  { %248 = vmatprep.subr.bf16.mxu0 %v551_v22  ;;  %501 = vmatprep.subr.bf16.mxu1 %v551_v22 }
  0x27   :  { %249 = vmatpush1.bf16.msra.mxu0 %v553_v23  ;;  %517 = vmatpush1.bf16.msra.mxu1 %v553_v23 }
  0x28   :  { %250 = vmatprep.subr.bf16.mxu0 %v554_v24  ;;  %502 = vmatprep.subr.bf16.mxu1 %v554_v24 }
  0x2b   :  { %251 = vmatpush1.bf16.msra.mxu0 %v556_v25  ;;  %518 = vmatpush1.bf16.msra.mxu1 %v556_v25 }
  0x2c   :  { %252 = vmatprep.subr.bf16.mxu0 %v557_v26  ;;  %503 = vmatprep.subr.bf16.mxu1 %v557_v26 }
  0x2f   :  { %253 = vmatpush1.bf16.msra.mxu0 %v559_v27  ;;  %519 = vmatpush1.bf16.msra.mxu1 %v559_v27 }
  0x30   :  { %254 = vmatprep.subr.bf16.mxu0 %v560_v28  ;;  %504 = vmatprep.subr.bf16.mxu1 %v560_v28 }
  0x33   :  { %255 = vmatpush1.bf16.msra.mxu0 %v562_v29  ;;  %520 = vmatpush1.bf16.msra.mxu1 %v562_v29 }
  0x34   :  { %256 = vmatprep.subr.bf16.mxu0 %v563_v30  ;;  %505 = vmatprep.subr.bf16.mxu1 %v563_v30 }
  0x37   :  { %257 = vmatpush1.bf16.msra.mxu0 %v565_v31  ;;  %521 = vmatpush1.bf16.msra.mxu1 %v565_v31 }
  0x38   :  { %258 = vmatprep.subr.bf16.mxu0 %v566_v32  ;;  %506 = vmatprep.subr.bf16.mxu1 %v566_v32 }
  0x3b   :  { %259 = vmatpush1.bf16.msra.mxu0 %v568_v33  ;;  %522 = vmatpush1.bf16.msra.mxu1 %v568_v33 }
  0x3c   :  { %260 = vmatprep.subr.bf16.mxu0 %v569_v34  ;;  %507 = vmatprep.subr.bf16.mxu1 %v569_v34 }
  0x3f   :  { %261 = vmatpush1.bf16.msra.mxu0 %v571_v35  ;;  %523 = vmatpush1.bf16.msra.mxu1 %v571_v35 }
  0x42   :  { %263 = vmatmul.mubr.bf16.vlgmr.msra.gmra.mrb[0].mxu0 %v19_v38  ;;  %283 = vmatmul.mubr.bf16.vlgmr.msra.gmra.mrb[0].mxu1 %v23_v39 }
  0x43   :  { %272 = vmatprep.mubr.bf16.mxu0 %v22_v40  ;;  %292 = vmatprep.mubr.bf16.mxu1 %v26_v41 }
  0x4a   :  { %273 = vmatmul.mubr.bf16.gmra.mrb[4].mxu0 %v21_v42  ;;  %293 = vmatmul.mubr.bf16.gmra.mrb[4].mxu1 %v25_v43 }
 0x115   :  { %v264_v51 = vpop.f32.mrb[0].mxu0  ;;  %v284_v52 = vpop.f32.mrb[0].mxu1 }
 0x116   :  { %v265_v53 = vadd.f32 %v264_v51, %v711_v49  ;;  %v285_v54 = vadd.f32 %v284_v52, %v711_v49  ;;  %v266_v55 = vpop.f32.mrb[1].mxu0  ;;  %v286_v56 = vpop.f32.mrb[1].mxu1 }
 0x117   :  { %v267_v57 = vadd.f32 %v266_v55, %v713_v50  ;;  %v287_v58 = vadd.f32 %v286_v56, %v713_v50  ;;  %v268_v59 = vpop.f32.mrb[2].mxu0  ;;  %v288_v60 = vpop.f32.mrb[2].mxu1 }
 0x118   :  { %v303_v61 = vmax.f32 %v265_v53, 0.0  ;;  %v311_v62 = vmax.f32 %v285_v54, 0.0  ;;  %v269_v63 = vadd.f32 %v268_v59, %v711_v49  ;;  %v289_v0 = vadd.f32 %v288_v60, %v711_v49  ;;  %v270_v1 = vpop.f32.mrb[3].mxu0  ;;  %v290_v2 = vpop.f32.mrb[3].mxu1 }
 0x119   :  { %v304_v3 = vmax.f32 %v267_v57, 0.0  ;;  %v312_v4 = vmax.f32 %v287_v58, 0.0  ;;  %v271_v5 = vadd.f32 %v270_v1, %v713_v50  ;;  %v291_v6 = vadd.f32 %v290_v2, %v713_v50 }
 0x11a   :  { %v319_v7 = vrot.slane %v303_v61, 4  ;;  %v367_v8 = vrot.slane %v311_v62, 4  ;;  %v305_v9 = vmax.f32 %v269_v63, 0.0  ;;  %v313_v10 = vmax.f32 %v289_v0, 0.0 }
 0x11b   :  { %v325_v11 = vrot.slane %v304_v3, 4  ;;  %v373_v12 = vrot.slane %v312_v4, 4  ;;  %v306_v13 = vmax.f32 %v271_v5, 0.0  ;;  %v314_v14 = vmax.f32 %v291_v6, 0.0 }
 0x11c   :  { %v320_v15 = vmax.f32 %v303_v61, %v319_v7  ;;  %v368_v16 = vmax.f32 %v311_v62, %v367_v8  ;;  %v331_v17 = vrot.slane %v305_v9, 4  ;;  %v379_v18 = vrot.slane %v313_v10, 4 }
 0x11d   :  { %v326_v19 = vmax.f32 %v304_v3, %v325_v11  ;;  %v374_v20 = vmax.f32 %v312_v4, %v373_v12  ;;  %v337_v21 = vrot.slane %v306_v13, 4  ;;  %v385_v22 = vrot.slane %v314_v14, 4  ;;  %v274_v23 = vpop.f32.mrb[4].mxu0  ;;  %v294_v24 = vpop.f32.mrb[4].mxu1 }
 0x11e   :  { %v321_v25 = vrot.slane %v320_v15, 2  ;;  %v369_v26 = vrot.slane %v368_v16, 2  ;;  %v332_v27 = vmax.f32 %v305_v9, %v331_v17  ;;  %v380_v28 = vmax.f32 %v313_v10, %v379_v18  ;;  %v276_v29 = vpop.f32.mrb[5].mxu0  ;;  %v296_v30 = vpop.f32.mrb[5].mxu1 }
 0x11f   :  { %v327_v31 = vrot.slane %v326_v19, 2  ;;  %v338_v32 = vmax.f32 %v306_v13, %v337_v21  ;;  %v278_v33 = vpop.f32.mrb[6].mxu0  ;;  %v298_v34 = vpop.f32.mrb[6].mxu1  ;;  %v375_v36 = vrot.slane %v374_v20, 2  ;;  %v386_v38 = vmax.f32 %v314_v14, %v385_v22 }
 0x120   :  { %v322_v35 = vmax.f32 %v320_v15, %v321_v25  ;;  %v333_v37 = vrot.slane %v332_v27, 2  ;;  %v280_v39 = vpop.f32.mrb[7].mxu0  ;;  %v300_v40 = vpop.f32.mrb[7].mxu1  ;;  %v723_v41 = vmax.f32 %v368_v16, %v369_v26  ;;  %v381_v43 = vrot.slane %v380_v28, 2 }
 0x121   :  { %v328_v42 = vmax.f32 %v326_v19, %v327_v31  ;;  %v339_v44 = vrot.slane %v338_v32, 2  ;;  %v725_v51 = vmax.f32 %v374_v20, %v375_v36  ;;  %v387_v56 = vrot.slane %v386_v38, 2 }
 0x122   :  { %v323_v45 = vrot.slane %v322_v35, 1  ;;  %v334_v46 = vmax.f32 %v332_v27, %v333_v37  ;;  %v371_v53 = vrot.slane %v723_v41, 1  ;;  %v728_v54 = vmax.f32 %v380_v28, %v381_v43 }
 0x123   :  { %v329_v47 = vrot.slane %v328_v42, 1  ;;  %v340_v48 = vmax.f32 %v338_v32, %v339_v44  ;;  %v275_v59 = vadd.f32 %v274_v23, %v711_v49  ;;  %v295_v60 = vadd.f32 %v294_v24, %v711_v49 }
 0x124   :  { %v335_v52 = vrot.slane %v334_v46, 1  ;;  %v324_v57 = vmax.f32 %v322_v35, %v323_v45  ;;  %v277_v63 = vadd.f32 %v276_v29, %v713_v50  ;;  %v297_v0 = vadd.f32 %v296_v30, %v713_v50 }
 0x125   :  { %v341_v55 = vrot.slane %v340_v48, 1  ;;  %v330_v61 = vmax.f32 %v328_v42, %v329_v47  ;;  %v307_v2 = vmax.f32 %v275_v59, 0.0  ;;  %v315_v3 = vmax.f32 %v295_v60, 0.0 }
 0x126   :  { %v336_v58 = vmax.f32 %v334_v46, %v335_v52  ;;  %v279_v4 = vadd.f32 %v278_v33, %v711_v49  ;;  %v308_v6 = vmax.f32 %v277_v63, 0.0  ;;  %v316_v7 = vmax.f32 %v297_v0, 0.0 }
 0x127   :  { %v342_v62 = vmax.f32 %v340_v48, %v341_v55  ;;  %v299_v8 = vadd.f32 %v298_v34, %v711_v49  ;;  %v343_v9 = vrot.slane %v307_v2, 4  ;;  %v391_v10 = vrot.slane %v315_v3, 4 }
 0x128   :  { %v432_v1 = vsel %vm431_vm0, %v336_v58, %v324_v57  ;;  %v309_v11 = vmax.f32 %v279_v4, 0.0  ;;  %v281_v12 = vadd.f32 %v280_v39, %v713_v50  ;;  %v349_v13 = vrot.slane %v308_v6, 4 }
 0x129   :  { %v445_v5 = vsel %vm431_vm0, %v342_v62, %v330_v61  ;;  %v397_v14 = vrot.slane %v316_v7, 4  ;;  %v317_v15 = vmax.f32 %v299_v8, 0.0  ;;  %v301_v16 = vadd.f32 %v300_v40, %v713_v50 }
 0x12a   :  { %v344_v17 = vmax.f32 %v307_v2, %v343_v9  ;;  %v392_v18 = vmax.f32 %v315_v3, %v391_v10  ;;  %v355_v19 = vrot.slane %v309_v11, 4  ;;  %v310_v20 = vmax.f32 %v281_v12, 0.0 }
 0x12b   :  { %v350_v21 = vmax.f32 %v308_v6, %v349_v13  ;;  %v398_v22 = vmax.f32 %v316_v7, %v397_v14  ;;  %v403_v23 = vrot.slane %v317_v15, 4  ;;  %v318_v49 = vmax.f32 %v301_v16, 0.0 }
 0x12c   :  { %v345_v24 = vrot.slane %v344_v17, 2  ;;  %v393_v25 = vrot.slane %v392_v18, 2  ;;  %v356_v26 = vmax.f32 %v309_v11, %v355_v19  ;;  %v361_v27 = vrot.slane %v310_v20, 4 }
 0x12d   :  { %v351_v28 = vrot.slane %v350_v21, 2  ;;  %v399_v29 = vrot.slane %v398_v22, 2  ;;  %v404_v30 = vmax.f32 %v317_v15, %v403_v23  ;;  %v409_v31 = vrot.slane %v318_v49, 4 }
 0x12e   :  { %v388_v50 = vmax.f32 %v386_v38, %v387_v56  ;;  %v346_v32 = vmax.f32 %v344_v17, %v345_v24  ;;  %v357_v33 = vrot.slane %v356_v26, 2  ;;  %v362_v34 = vmax.f32 %v310_v20, %v361_v27 }
 0x12f   :  { %v394_v35 = vmax.f32 %v392_v18, %v393_v25  ;;  %v352_v36 = vmax.f32 %v350_v21, %v351_v28  ;;  %v405_v37 = vrot.slane %v404_v30, 2  ;;  %v410_v39 = vmax.f32 %v318_v49, %v409_v31 }
 0x130   :  { %v377_v40 = vrot.slane %v725_v51, 1  ;;  %v347_v42 = vrot.slane %v346_v32, 1  ;;  %v358_v43 = vmax.f32 %v356_v26, %v357_v33  ;;  %v363_v44 = vrot.slane %v362_v34, 2 }
 0x131   :  { %v353_v45 = vrot.slane %v352_v36, 1  ;;  %v400_v46 = vmax.f32 %v398_v22, %v399_v29  ;;  %v406_v47 = vmax.f32 %v404_v30, %v405_v37  ;;  %v411_v48 = vrot.slane %v410_v39, 2 }
 0x132   :  { %v383_v52 = vrot.slane %v728_v54, 1  ;;  %v348_v55 = vmax.f32 %v346_v32, %v347_v42  ;;  %v359_v38 = vrot.slane %v358_v43, 1  ;;  %v364_v56 = vmax.f32 %v362_v34, %v363_v44 }
 0x133   :  { %v389_v57 = vrot.slane %v388_v50, 1  ;;  %v395_v58 = vrot.slane %v394_v35, 1  ;;  %v354_v59 = vmax.f32 %v352_v36, %v353_v45  ;;  %v412_v60 = vmax.f32 %v410_v39, %v411_v48 }
 0x134   :  { %v434_v61 = vsel %vm433_vm1, %v348_v55, %v432_v1  ;;  %v360_v62 = vmax.f32 %v358_v43, %v359_v38  ;;  %v407_v63 = vrot.slane %v406_v47, 1  ;;  %v365_v0 = vrot.slane %v364_v56, 1 }
 0x135   :  { %v372_v2 = vmax.f32 %v723_v41, %v371_v53  ;;  %v446_v3 = vsel %vm433_vm1, %v354_v59, %v445_v5  ;;  %v401_v4 = vrot.slane %v400_v46, 1  ;;  %v384_v6 = vmax.f32 %v728_v54, %v383_v52 }
 0x136   :  { %v436_v7 = vsel %vm435_vm2, %v360_v62, %v434_v61  ;;  %v366_v8 = vmax.f32 %v364_v56, %v365_v0  ;;  %v413_v9 = vrot.slane %v412_v60, 1  ;;  %v378_v10 = vmax.f32 %v725_v51, %v377_v40 }
 0x137   :  { %v396_v1 = vmax.f32 %v394_v35, %v395_v58  ;;  %v438_v11 = vsel %vm437_vm3, %v372_v2, %v436_v7  ;;  %v390_v12 = vmax.f32 %v388_v50, %v389_v57  ;;  %v408_v13 = vmax.f32 %v406_v47, %v407_v63 }
 0x138   :  { %v440_v41 = vsel %vm439_vm4, %v384_v6, %v438_v11  ;;  %v447_v53 = vsel %vm435_vm2, %v366_v8, %v446_v3  ;;  %v402_v5 = vmax.f32 %v400_v46, %v401_v4  ;;  %v414_v16 = vmax.f32 %v412_v60, %v413_v9 }
 0x139   :  { %v442_v14 = vsel %vm441_vm5, %v396_v1, %v440_v41  ;;  %v448_v54 = vsel %vm437_vm3, %v378_v10, %v447_v53 }
 0x13a   :  { %v444_v15 = vsel %vm443_vm6, %v408_v13, %v442_v14  ;;  %v449_v17 = vsel %vm439_vm4, %v390_v12, %v448_v54 }
 0x13b   :  { %454 = vst [vmem:[%s766_s3] sm:$0xff] %v444_v15  ;;  %v450_v51 = vsel %vm441_vm5, %v402_v5, %v449_v17 }
 0x13c   :  { %v451_v18 = vsel %vm443_vm6, %v414_v16, %v450_v51 }
 0x13d   :  { %455 = vst [vmem:[%s766_s3 + $0x8] sm:$0xff] %v451_v18 }

</bundles_post_ra>
